<compile_context>
chip_gen: v7x
topology: tpu7x:2x2x1
jax: 0.10.0
libtpu: 0.0.40
codegen_flags: <defaults>
</compile_context>

<pallas_src>
import math

import jax
import jax.numpy as jnp
import numpy as np
from jax.experimental import pallas as pl
from jax.experimental.pallas import tpu as pltpu


def _silu(v):
    # SiLU via EUP exp + approx reciprocal (keeps the divide off the VALU slots).
    return v * pl.reciprocal(1.0 + jnp.exp(-v), approx=True)


# ----------------------------------------------------------------------------
# Pallas kernel: grid = (batch, L-tiles).
# ----------------------------------------------------------------------------
def mamba_kernel(x_ref, w_in_ref, conv_w_ref, conv_b_ref, w_xproj_ref,
                 dt_w_ref, dt_b_ref, a_neg_ref, dvec_ref, w_out_ref,
                 out_ref,
                 h_ref, conv_buf_ref, dlt_ref, du_ref, b_ref, c_ref, y_ref):
    l_idx = pl.program_id(1)
    tl = x_ref.shape[1]
    d_conv, d_inner = conv_w_ref.shape
    d_state = a_neg_ref.shape[0]
    dt_rank = dt_w_ref.shape[0]
    pad = d_conv - 1
    base = conv_buf_ref.shape[0] - tl          # xp staging region start (8-aligned)

    # Reset carried state at the first L-tile of every sequence.
    @pl.when(l_idx == 0)
    def _():
        h_ref[...] = jnp.zeros_like(h_ref)
        conv_buf_ref[...] = jnp.zeros_like(conv_buf_ref)

    # ---- fused in_proj (bias=False): x -> (x_branch | z_branch), bf16 MXU ----
    x = x_ref[0].astype(jnp.bfloat16)                                     # (tl, d_model)
    xz = jnp.dot(x, w_in_ref[...], preferred_element_type=jnp.float32)    # (tl, 2*d_inner)
    xp = xz[:, :d_inner]
    z = xz[:, d_inner:]

    # ---- causal depthwise conv1d (padding=d_conv-1, truncated to L) + SiLU ---
    conv_buf_ref[base:base + tl, :] = xp
    xc = jnp.zeros((tl, d_inner), jnp.float32) + conv_b_ref[...]
    for k in range(d_conv):
        lo = base - pad + k
        xc = xc + conv_buf_ref[lo:lo + tl, :] * conv_w_ref[k:k + 1, :]
    # carry the last (d_conv-1) in_proj rows into the head for the next tile
    conv_buf_ref[base - pad:base, :] = conv_buf_ref[base + tl - pad:base + tl, :]
    xc = _silu(xc)

    # ---- fused x_proj (bias=False): [dt | B | C] in one matmul ---------------
    dbc = jnp.dot(xc.astype(jnp.bfloat16), w_xproj_ref[...],
                  preferred_element_type=jnp.float32)                     # (tl, dt_rank+2*d_state)
    dt_low = dbc[:, :dt_rank]
    b_ref[...] = dbc[:, dt_rank:dt_rank + d_state]
    c_ref[...] = dbc[:, dt_rank + d_state:]

    # ---- dt_proj (single matmul) + softplus (threshold=20, as F.softplus) ----
    dpre = jnp.dot(dt_low, dt_w_ref[...],
                   preferred_element_type=jnp.float32) + dt_b_ref[...]
    delta = jnp.where(dpre > 20.0, dpre,
                      jnp.log(1.0 + jnp.exp(jnp.minimum(dpre, 20.0))))
    dlt_ref[...] = delta
    du_ref[...] = delta * xc

    # ---- selective scan over this tile's timesteps ---------------------------
    a_neg = a_neg_ref[...]                                                # (d_state, d_inner) = -exp(A_log)^T
    ri = jax.lax.broadcasted_iota(jnp.int32, (d_state, d_state), 0)
    ci = jax.lax.broadcasted_iota(jnp.int32, (d_state, d_state), 1)
    eye_ds = (ri == ci).astype(jnp.float32)

    def scan_step(t, h):
        dlt_row = dlt_ref[pl.ds(t, 1), :]                                 # (1, d_inner)
        du_row = du_ref[pl.ds(t, 1), :]                                   # (1, d_inner)
        b_row = b_ref[pl.ds(t, 1), :]                                     # (1, d_state)
        c_row = c_ref[pl.ds(t, 1), :]                                     # (1, d_state)
        dA_t = jnp.exp(dlt_row * a_neg)                                   # (d_state, d_inner), EUP
        # outer(B_t, delta_t * u_t) expressed as diag(B_t) @ bcast(du_t) -> MXU
        # (keeps the outer product off the VALU slots; MXU is idle in the scan)
        dBu_t = jnp.dot(eye_ds * b_row,
                        jnp.broadcast_to(du_row, (d_state, d_inner)),
                        preferred_element_type=jnp.float32)               # (d_state, d_inner)
        h = dA_t * h + dBu_t
        y_ref[pl.ds(t, 1), :] = jnp.dot(c_row, h,
                                        preferred_element_type=jnp.float32)
        return h

    # Small static unroll: EUP/MXU prep of step t+1 overlaps step t's serial
    # h-update chain.  Capped at 4 to bound vreg pressure for large d_inner.
    unroll = 1
    for cand in (4, 2):
        if tl % cand == 0:
            unroll = cand
            break
    n_grp = tl // unroll

    def grp_body(g, h):
        base_t = pl.multiple_of(g * unroll, unroll)
        for u in range(unroll):
            h = scan_step(base_t + u, h)
        return h

    h_ref[...] = jax.lax.fori_loop(0, n_grp, grp_body, h_ref[...])

    # ---- D skip connection, SiLU(z) gate, out_proj (bias=False) --------------
    y = y_ref[...] + xc * dvec_ref[...]
    y = y * _silu(z)
    out_ref[0] = jnp.dot(y.astype(jnp.bfloat16), w_out_ref[...],
                         preferred_element_type=jnp.float32).astype(out_ref.dtype)


# ----------------------------------------------------------------------------
# Wrapper: pallas_call setup (L tiled, batch parallel).
# ----------------------------------------------------------------------------
def mamba_block_forward(x, params, *, tile_l=None, need_cache=False):
    # TODO(synk): need_cache=True caching path not implemented (see header).
    B, L, D = x.shape
    d_conv, d_inner = params["conv_w"].shape
    d_state = params["A_neg"].shape[0]

    if tile_l is None:
        tile_l = min(L, 256)          # size against per-generation VMEM budget
    assert L % tile_l == 0 and (tile_l % 8 == 0 or tile_l == L)
    assert tile_l >= d_conv - 1
    assert d_conv <= 9                # conv tail carried in an 8-row head region
    n_l = L // tile_l

    order = ["w_in", "conv_w", "conv_b", "w_xproj", "dt_w", "dt_b",
             "A_neg", "D", "w_out"]
    weights = [params[k] for k in order]

    def weight_spec(a):
        nd = a.ndim
        return pl.BlockSpec(a.shape, (lambda b, l, _nd=nd: (0,) * _nd))

    out = pl.pallas_call(
        mamba_kernel,
        out_shape=jax.ShapeDtypeStruct((B, L, D), jnp.float32),
        grid_spec=pltpu.PrefetchScalarGridSpec(
            num_scalar_prefetch=0,
            grid=(B, n_l),
            in_specs=[pl.BlockSpec((1, tile_l, D), lambda b, l: (b, l, 0))]
                     + [weight_spec(w) for w in weights],
            out_specs=pl.BlockSpec((1, tile_l, D), lambda b, l: (b, l, 0)),
            scratch_shapes=[
                pltpu.VMEM((d_state, d_inner), jnp.float32),      # h carry (across L-tiles)
                pltpu.VMEM((tile_l + 8, d_inner), jnp.float32),   # conv staging + tail carry
                pltpu.VMEM((tile_l, d_inner), jnp.float32),       # delta
                pltpu.VMEM((tile_l, d_inner), jnp.float32),       # delta * u
                pltpu.VMEM((tile_l, d_state), jnp.float32),       # B
                pltpu.VMEM((tile_l, d_state), jnp.float32),       # C
                pltpu.VMEM((tile_l, d_inner), jnp.float32),       # y (scan output)
            ],
        ),
        compiler_params=pltpu.CompilerParams(
            dimension_semantics=("parallel", "arbitrary")),
    )(x, *weights)
    return out, None


# ----------------------------------------------------------------------------
# Deterministic parameter init (shapes follow mamba_ssm.Mamba.__init__).
# Big matmul weights are pre-fused / pre-transposed / bf16; A = -exp(A_log)
# is precomputed on the host.
# ----------------------------------------------------------------------------
def init_params(key, d_model, d_state, d_conv, expand):
    d_inner = expand * d_model
    dt_rank = math.ceil(d_model / 16)
    ks = jax.random.split(key, 8)

    def nrm(k, shape, scale):
        return (scale * jax.random.normal(k, shape)).astype(jnp.float32)

    w_in = nrm(ks[0], (2 * d_inner, d_model), 0.05)               # in_proj.weight
    conv_w = nrm(ks[1], (d_inner, d_conv), 0.2)                   # conv1d.weight (squeezed)
    conv_b = nrm(ks[2], (d_inner,), 0.05)                         # conv1d.bias
    w_xproj = nrm(ks[3], (dt_rank + 2 * d_state, d_inner), 0.05)  # x_proj.weight
    dt_w = nrm(ks[4], (d_inner, dt_rank), 0.2)                    # dt_proj.weight
    dt_b = nrm(ks[5], (d_inner,), 0.05)                           # dt_proj.bias
    A_log = jnp.log(jnp.broadcast_to(
        jnp.arange(1, d_state + 1, dtype=jnp.float32), (d_inner, d_state)))
    D_vec = jnp.ones((d_inner,), jnp.float32)
    w_out = nrm(ks[6], (d_model, d_inner), 0.05)                  # out_proj.weight

    return {
        "w_in": jnp.asarray(w_in.T).astype(jnp.bfloat16),         # (d_model, 2*d_inner): [x | z]
        "conv_w": jnp.asarray(conv_w.T),                          # (d_conv, d_inner)
        "conv_b": conv_b[None, :],                                # (1, d_inner)
        "w_xproj": jnp.asarray(w_xproj.T).astype(jnp.bfloat16),   # (d_inner, dt_rank+2*d_state)
        "dt_w": jnp.asarray(dt_w.T),                              # (dt_rank, d_inner)
        "dt_b": dt_b[None, :],                                    # (1, d_inner)
        "A_neg": -jnp.exp(jnp.asarray(A_log.T)),                  # (d_state, d_inner) = -exp(A_log)^T
        "D": D_vec[None, :],                                      # (1, d_inner)
        "w_out": jnp.asarray(w_out.T).astype(jnp.bfloat16),       # (d_inner, d_model)
    }


# ----------------------------------------------------------------------------
# Pure-JAX reference (f32, same math, for verification).
# ----------------------------------------------------------------------------
def reference_forward(x, p, d_conv, d_state):
    w_in = p["w_in"].astype(jnp.float32)
    w_xproj = p["w_xproj"].astype(jnp.float32)
    w_out = p["w_out"].astype(jnp.float32)
    d_inner = p["conv_w"].shape[1]
    dt_rank = p["dt_w"].shape[0]
    Bsz, L, _ = x.shape

    xz = jnp.einsum("bld,de->ble", x, w_in)
    xp, z = xz[..., :d_inner], xz[..., d_inner:]

    xpad = jnp.concatenate(
        [jnp.zeros((Bsz, d_conv - 1, d_inner), x.dtype), xp], axis=1)
    xc = jnp.zeros_like(xp) + p["conv_b"]
    for k in range(d_conv):
        xc = xc + xpad[:, k:k + L, :] * p["conv_w"][k]
    xc = xc * jax.nn.sigmoid(xc)

    dbc = jnp.einsum("ble,ef->blf", xc, w_xproj)
    dt_low = dbc[..., :dt_rank]
    Bm = dbc[..., dt_rank:dt_rank + d_state]
    Cm = dbc[..., dt_rank + d_state:]
    dpre = jnp.einsum("blr,re->ble", dt_low, p["dt_w"]) + p["dt_b"]
    delta = jnp.where(dpre > 20.0, dpre,
                      jnp.log(1.0 + jnp.exp(jnp.minimum(dpre, 20.0))))
    A = p["A_neg"]                                            # (d_state, d_inner)

    h = jnp.zeros((Bsz, d_state, d_inner), jnp.float32)
    ys = []
    for t in range(L):
        dA = jnp.exp(delta[:, t, None, :] * A[None])
        dBu = (delta[:, t, :] * xc[:, t, :])[:, None, :] * Bm[:, t, :, None]
        h = dA * h + dBu
        y_t = jnp.sum(h * Cm[:, t, :, None], axis=1) + xc[:, t, :] * p["D"]
        ys.append(y_t)
    y = jnp.stack(ys, axis=1)
    y = y * (z * jax.nn.sigmoid(z))
    return jnp.einsum("ble,ed->bld", y, w_out)


if __name__ == "__main__":
    # Small shapes consistent with MambaBlock(io_size=32, d_state=16, d_conv=4, expand=2)
    B, L, d_model = 2, 16, 32
    d_state, d_conv, expand = 16, 4, 2
    tile_l = 8                                  # 2 L-tiles -> exercises the state carry

    key = jax.random.PRNGKey(0)
    kx, kp = jax.random.split(key)
    x = jax.random.normal(kx, (B, L, d_model), dtype=jnp.float32)
    params = init_params(kp, d_model, d_state, d_conv, expand)

    out, cache = mamba_block_forward(x, params, tile_l=tile_l, need_cache=False)
    out = jax.block_until_ready(out)
    assert cache is None and out.shape == (B, L, d_model)

    ref = jax.block_until_ready(reference_forward(x, params, d_conv, d_state))
    np.testing.assert_allclose(np.asarray(out), np.asarray(ref), rtol=3e-2, atol=1e-2)

    print("KERNEL_OK")
</pallas_src>

<mosaic_0001>
module attributes {stable_mosaic.version = 11 : i64} {
  func.func @mamba_kernel(%arg0: i32, %arg1: i32, %arg2: memref<1x8x32xf32, #tpu.memory_space<vmem>>, %arg3: memref<32x128xbf16, #tpu.memory_space<vmem>>, %arg4: memref<4x64xf32, #tpu.memory_space<vmem>>, %arg5: memref<1x64xf32, #tpu.memory_space<vmem>>, %arg6: memref<64x34xbf16, #tpu.memory_space<vmem>>, %arg7: memref<2x64xf32, #tpu.memory_space<vmem>>, %arg8: memref<1x64xf32, #tpu.memory_space<vmem>>, %arg9: memref<16x64xf32, #tpu.memory_space<vmem>>, %arg10: memref<1x64xf32, #tpu.memory_space<vmem>>, %arg11: memref<64x32xbf16, #tpu.memory_space<vmem>>, %arg12: memref<1x8x32xf32, #tpu.memory_space<vmem>>, %arg13: memref<16x64xf32, #tpu.memory_space<vmem>>, %arg14: memref<16x64xf32, #tpu.memory_space<vmem>>, %arg15: memref<8x64xf32, #tpu.memory_space<vmem>>, %arg16: memref<8x64xf32, #tpu.memory_space<vmem>>, %arg17: memref<8x16xf32, #tpu.memory_space<vmem>>, %arg18: memref<8x16xf32, #tpu.memory_space<vmem>>, %arg19: memref<8x64xf32, #tpu.memory_space<vmem>>) attributes {dimension_semantics = [#tpu.dimension_semantics<parallel>, #tpu.dimension_semantics<arbitrary>], iteration_bounds = array<i64: 2, 2>, scalar_prefetch = 0 : i64, scratch_operands = 7 : i64, tpu.core_type = #tpu.core_type<tc>, window_params = [{transform_indices = @transform_0, window_bounds = array<i64: 1, 8, 32>}, {pipeline_mode = #tpu.pipeline_mode<synchronous>, transform_indices = @transform_1, window_bounds = array<i64: 32, 128>}, {pipeline_mode = #tpu.pipeline_mode<synchronous>, transform_indices = @transform_2, window_bounds = array<i64: 4, 64>}, {pipeline_mode = #tpu.pipeline_mode<synchronous>, transform_indices = @transform_3, window_bounds = array<i64: 1, 64>}, {pipeline_mode = #tpu.pipeline_mode<synchronous>, transform_indices = @transform_4, window_bounds = array<i64: 64, 34>}, {pipeline_mode = #tpu.pipeline_mode<synchronous>, transform_indices = @transform_5, window_bounds = array<i64: 2, 64>}, {pipeline_mode = #tpu.pipeline_mode<synchronous>, transform_indices = @transform_6, window_bounds = array<i64: 1, 64>}, {pipeline_mode = #tpu.pipeline_mode<synchronous>, transform_indices = @transform_7, window_bounds = array<i64: 16, 64>}, {pipeline_mode = #tpu.pipeline_mode<synchronous>, transform_indices = @transform_8, window_bounds = array<i64: 1, 64>}, {pipeline_mode = #tpu.pipeline_mode<synchronous>, transform_indices = @transform_9, window_bounds = array<i64: 64, 32>}, {transform_indices = @transform_10, window_bounds = array<i64: 1, 8, 32>}]} {
    %c0_i32 = arith.constant 0 : i32
    %0 = arith.cmpi eq, %arg1, %c0_i32 : i32
    %1 = arith.extui %0 : i1 to i32
    %c0_i32_0 = arith.constant 0 : i32
    %2 = arith.cmpi ne, %1, %c0_i32_0 : i32
    scf.if %2 {
      %cst_63 = arith.constant 0.000000e+00 : f32
      %98 = vector.broadcast %cst_63 : f32 to vector<16x64xf32>
      %c0_64 = arith.constant 0 : index
      %c0_65 = arith.constant 0 : index
      %99 = vector.load %arg13[%c0_64, %c0_65] : memref<16x64xf32, #tpu.memory_space<vmem>>, vector<16x64xf32>
      tpu.vector_store %arg13[%c0_64, %c0_65], %98 {strides = array<i32>} : memref<16x64xf32, #tpu.memory_space<vmem>>, vector<16x64xf32>,
      %cst_66 = arith.constant 0.000000e+00 : f32
      %100 = vector.broadcast %cst_66 : f32 to vector<16x64xf32>
      %c0_67 = arith.constant 0 : index
      %c0_68 = arith.constant 0 : index
      %101 = vector.load %arg14[%c0_67, %c0_68] : memref<16x64xf32, #tpu.memory_space<vmem>>, vector<16x64xf32>
      tpu.vector_store %arg14[%c0_67, %c0_68], %100 {strides = array<i32>} : memref<16x64xf32, #tpu.memory_space<vmem>>, vector<16x64xf32>,
    } else {
    }
    %c0 = arith.constant 0 : index
    %c0_1 = arith.constant 0 : index
    %c0_2 = arith.constant 0 : index
    %3 = vector.load %arg2[%c0, %c0_1, %c0_2] : memref<1x8x32xf32, #tpu.memory_space<vmem>>, vector<1x8x32xf32>
    %4 = vector.shape_cast %3 : vector<1x8x32xf32> to vector<8x32xf32>
    %5 = arith.truncf %4 : vector<8x32xf32> to vector<8x32xbf16>
    %c0_3 = arith.constant 0 : index
    %c0_4 = arith.constant 0 : index
    %6 = vector.load %arg3[%c0_3, %c0_4] : memref<32x128xbf16, #tpu.memory_space<vmem>>, vector<32x128xbf16>
    %cst = arith.constant dense<0.000000e+00> : vector<8x128xf32>
    %7 = tpu.matmul %5, %6, %cst {dimension_numbers = #tpu.dot_dimension_numbers<[1], [0], [0], [1], [0, 0, 1, 1], [], []>} : vector<8x32xbf16>, vector<32x128xbf16>, vector<8x128xf32> -> vector<8x128xf32>
    %8 = vector.extract_strided_slice %7 {offsets = [0, 0], sizes = [8, 64], strides = [1, 1]} : vector<8x128xf32> to vector<8x64xf32>
    %9 = vector.extract_strided_slice %7 {offsets = [0, 64], sizes = [8, 64], strides = [1, 1]} : vector<8x128xf32> to vector<8x64xf32>
    %c8 = arith.constant 8 : index
    %c0_5 = arith.constant 0 : index
    %10 = vector.load %arg14[%c8, %c0_5] : memref<16x64xf32, #tpu.memory_space<vmem>>, vector<8x64xf32>
    tpu.vector_store %arg14[%c8, %c0_5], %8 {strides = array<i32>} : memref<16x64xf32, #tpu.memory_space<vmem>>, vector<8x64xf32>,
    %cst_6 = arith.constant 0.000000e+00 : f32
    %11 = vector.broadcast %cst_6 : f32 to vector<8x64xf32>
    %c0_7 = arith.constant 0 : index
    %c0_8 = arith.constant 0 : index
    %12 = vector.load %arg5[%c0_7, %c0_8] : memref<1x64xf32, #tpu.memory_space<vmem>>, vector<1x64xf32>
    %13 = vector.broadcast %12 : vector<1x64xf32> to vector<8x64xf32>
    %14 = arith.addf %11, %13 : vector<8x64xf32>
    %c5 = arith.constant 5 : index
    %c0_9 = arith.constant 0 : index
    %15 = vector.load %arg14[%c5, %c0_9] : memref<16x64xf32, #tpu.memory_space<vmem>>, vector<8x64xf32>
    %c0_10 = arith.constant 0 : index
    %c0_11 = arith.constant 0 : index
    %16 = vector.load %arg4[%c0_10, %c0_11] : memref<4x64xf32, #tpu.memory_space<vmem>>, vector<1x64xf32>
    %17 = vector.broadcast %16 : vector<1x64xf32> to vector<8x64xf32>
    %18 = arith.mulf %15, %17 : vector<8x64xf32>
    %19 = arith.addf %14, %18 : vector<8x64xf32>
    %c6 = arith.constant 6 : index
    %c0_12 = arith.constant 0 : index
    %20 = vector.load %arg14[%c6, %c0_12] : memref<16x64xf32, #tpu.memory_space<vmem>>, vector<8x64xf32>
    %c1 = arith.constant 1 : index
    %c0_13 = arith.constant 0 : index
    %21 = vector.load %arg4[%c1, %c0_13] : memref<4x64xf32, #tpu.memory_space<vmem>>, vector<1x64xf32>
    %22 = vector.broadcast %21 : vector<1x64xf32> to vector<8x64xf32>
    %23 = arith.mulf %20, %22 : vector<8x64xf32>
    %24 = arith.addf %19, %23 : vector<8x64xf32>
    %c7 = arith.constant 7 : index
    %c0_14 = arith.constant 0 : index
    %25 = vector.load %arg14[%c7, %c0_14] : memref<16x64xf32, #tpu.memory_space<vmem>>, vector<8x64xf32>
    %c2 = arith.constant 2 : index
    %c0_15 = arith.constant 0 : index
    %26 = vector.load %arg4[%c2, %c0_15] : memref<4x64xf32, #tpu.memory_space<vmem>>, vector<1x64xf32>
    %27 = vector.broadcast %26 : vector<1x64xf32> to vector<8x64xf32>
    %28 = arith.mulf %25, %27 : vector<8x64xf32>
    %29 = arith.addf %24, %28 : vector<8x64xf32>
    %c8_16 = arith.constant 8 : index
    %c0_17 = arith.constant 0 : index
    %30 = vector.load %arg14[%c8_16, %c0_17] : memref<16x64xf32, #tpu.memory_space<vmem>>, vector<8x64xf32>
    %c3 = arith.constant 3 : index
    %c0_18 = arith.constant 0 : index
    %31 = vector.load %arg4[%c3, %c0_18] : memref<4x64xf32, #tpu.memory_space<vmem>>, vector<1x64xf32>
    %32 = vector.broadcast %31 : vector<1x64xf32> to vector<8x64xf32>
    %33 = arith.mulf %30, %32 : vector<8x64xf32>
    %34 = arith.addf %29, %33 : vector<8x64xf32>
    %c13 = arith.constant 13 : index
    %c0_19 = arith.constant 0 : index
    %35 = vector.load %arg14[%c13, %c0_19] : memref<16x64xf32, #tpu.memory_space<vmem>>, vector<3x64xf32>
    %c5_20 = arith.constant 5 : index
    %c0_21 = arith.constant 0 : index
    %36 = vector.load %arg14[%c5_20, %c0_21] : memref<16x64xf32, #tpu.memory_space<vmem>>, vector<3x64xf32>
    tpu.vector_store %arg14[%c5_20, %c0_21], %35 {strides = array<i32>} : memref<16x64xf32, #tpu.memory_space<vmem>>, vector<3x64xf32>,
    %cst_22 = arith.constant 0.000000e+00 : f32
    %37 = vector.broadcast %cst_22 : f32 to vector<8x64xf32>
    %38 = arith.subf %37, %34 : vector<8x64xf32>
    %39 = math.exp %38 : vector<8x64xf32>
    %cst_23 = arith.constant 1.000000e+00 : f32
    %40 = vector.broadcast %cst_23 : f32 to vector<8x64xf32>
    %41 = arith.addf %40, %39 : vector<8x64xf32>
    %42 = tpu.reciprocal %41 {approx = true} : vector<8x64xf32> -> vector<8x64xf32>
    %43 = arith.mulf %34, %42 : vector<8x64xf32>
    %44 = arith.truncf %43 : vector<8x64xf32> to vector<8x64xbf16>
    %c0_24 = arith.constant 0 : index
    %c0_25 = arith.constant 0 : index
    %45 = vector.load %arg6[%c0_24, %c0_25] : memref<64x34xbf16, #tpu.memory_space<vmem>>, vector<64x34xbf16>
    %cst_26 = arith.constant dense<0.000000e+00> : vector<8x34xf32>
    %46 = tpu.matmul %44, %45, %cst_26 {dimension_numbers = #tpu.dot_dimension_numbers<[1], [0], [0], [1], [0, 0, 1, 1], [], []>} : vector<8x64xbf16>, vector<64x34xbf16>, vector<8x34xf32> -> vector<8x34xf32>
    %47 = vector.extract_strided_slice %46 {offsets = [0, 0], sizes = [8, 2], strides = [1, 1]} : vector<8x34xf32> to vector<8x2xf32>
    %48 = vector.extract_strided_slice %46 {offsets = [0, 2], sizes = [8, 16], strides = [1, 1]} : vector<8x34xf32> to vector<8x16xf32>
    %c0_27 = arith.constant 0 : index
    %c0_28 = arith.constant 0 : index
    %49 = vector.load %arg17[%c0_27, %c0_28] : memref<8x16xf32, #tpu.memory_space<vmem>>, vector<8x16xf32>
    tpu.vector_store %arg17[%c0_27, %c0_28], %48 {strides = array<i32>} : memref<8x16xf32, #tpu.memory_space<vmem>>, vector<8x16xf32>,
    %50 = vector.extract_strided_slice %46 {offsets = [0, 18], sizes = [8, 16], strides = [1, 1]} : vector<8x34xf32> to vector<8x16xf32>
    %c0_29 = arith.constant 0 : index
    %c0_30 = arith.constant 0 : index
    %51 = vector.load %arg18[%c0_29, %c0_30] : memref<8x16xf32, #tpu.memory_space<vmem>>, vector<8x16xf32>
    tpu.vector_store %arg18[%c0_29, %c0_30], %50 {strides = array<i32>} : memref<8x16xf32, #tpu.memory_space<vmem>>, vector<8x16xf32>,
    %c0_31 = arith.constant 0 : index
    %c0_32 = arith.constant 0 : index
    %52 = vector.load %arg7[%c0_31, %c0_32] : memref<2x64xf32, #tpu.memory_space<vmem>>, vector<2x64xf32>
    %cst_33 = arith.constant dense<0.000000e+00> : vector<8x64xf32>
    %53 = tpu.matmul %47, %52, %cst_33 {dimension_numbers = #tpu.dot_dimension_numbers<[1], [0], [0], [1], [0, 0, 1, 1], [], []>} : vector<8x2xf32>, vector<2x64xf32>, vector<8x64xf32> -> vector<8x64xf32>
    %c0_34 = arith.constant 0 : index
    %c0_35 = arith.constant 0 : index
    %54 = vector.load %arg8[%c0_34, %c0_35] : memref<1x64xf32, #tpu.memory_space<vmem>>, vector<1x64xf32>
    %55 = vector.broadcast %54 : vector<1x64xf32> to vector<8x64xf32>
    %56 = arith.addf %53, %55 : vector<8x64xf32>
    %cst_36 = arith.constant 2.000000e+01 : f32
    %57 = vector.broadcast %cst_36 : f32 to vector<8x64xf32>
    %58 = arith.cmpf ogt, %56, %57 : vector<8x64xf32>
    %cst_37 = arith.constant 2.000000e+01 : f32
    %59 = vector.broadcast %cst_37 : f32 to vector<8x64xf32>
    %60 = arith.minimumf %56, %59 : vector<8x64xf32>
    %61 = math.exp %60 : vector<8x64xf32>
    %cst_38 = arith.constant 1.000000e+00 : f32
    %62 = vector.broadcast %cst_38 : f32 to vector<8x64xf32>
    %63 = arith.addf %62, %61 : vector<8x64xf32>
    %64 = math.log %63 : vector<8x64xf32>
    %65 = arith.select %58, %56, %64 : vector<8x64xi1>, vector<8x64xf32>
    %c0_39 = arith.constant 0 : index
    %c0_40 = arith.constant 0 : index
    %66 = vector.load %arg15[%c0_39, %c0_40] : memref<8x64xf32, #tpu.memory_space<vmem>>, vector<8x64xf32>
    tpu.vector_store %arg15[%c0_39, %c0_40], %65 {strides = array<i32>} : memref<8x64xf32, #tpu.memory_space<vmem>>, vector<8x64xf32>,
    %67 = arith.mulf %65, %43 : vector<8x64xf32>
    %c0_41 = arith.constant 0 : index
    %c0_42 = arith.constant 0 : index
    %68 = vector.load %arg16[%c0_41, %c0_42] : memref<8x64xf32, #tpu.memory_space<vmem>>, vector<8x64xf32>
    tpu.vector_store %arg16[%c0_41, %c0_42], %67 {strides = array<i32>} : memref<8x64xf32, #tpu.memory_space<vmem>>, vector<8x64xf32>,
    %c0_43 = arith.constant 0 : index
    %c0_44 = arith.constant 0 : index
    %69 = vector.load %arg9[%c0_43, %c0_44] : memref<16x64xf32, #tpu.memory_space<vmem>>, vector<16x64xf32>
    %70 = tpu.iota {dimensions = array<i32: 0>} : vector<16x16xi32>
    %71 = tpu.iota {dimensions = array<i32: 1>} : vector<16x16xi32>
    %72 = arith.cmpi eq, %70, %71 : vector<16x16xi32>
    %73 = arith.extui %72 : vector<16x16xi1> to vector<16x16xi32>
    %74 = arith.sitofp %73 : vector<16x16xi32> to vector<16x16xf32>
    %c0_45 = arith.constant 0 : index
    %c0_46 = arith.constant 0 : index
    %75 = vector.load %arg13[%c0_45, %c0_46] : memref<16x64xf32, #tpu.memory_space<vmem>>, vector<16x64xf32>
    %c0_i32_47 = arith.constant 0 : i32
    %c2_i32 = arith.constant 2 : i32
    %76 = arith.addi %c0_i32_47, %c2_i32 : i32
    %c1_i32 = arith.constant 1 : i32
    %77 = scf.for %arg20 = %c0_i32_47 to %76 step %c1_i32 iter_args(%arg21 = %75) -> (vector<16x64xf32>)  : i32 {
      %c4_i32 = arith.constant 4 : i32
      %98 = arith.muli %arg20, %c4_i32 : i32
      %99 = tpu.assume_multiple %98, 4 : i32
      %c0_i32_63 = arith.constant 0 : i32
      %100 = arith.addi %99, %c0_i32_63 : i32
      %101 = arith.index_cast %100 : i32 to index
      %c0_64 = arith.constant 0 : index
      %102 = vector.load %arg15[%101, %c0_64] : memref<8x64xf32, #tpu.memory_space<vmem>>, vector<1x64xf32>
      %103 = arith.index_cast %100 : i32 to index
      %c0_65 = arith.constant 0 : index
      %104 = vector.load %arg16[%103, %c0_65] : memref<8x64xf32, #tpu.memory_space<vmem>>, vector<1x64xf32>
      %105 = arith.index_cast %100 : i32 to index
      %c0_66 = arith.constant 0 : index
      %106 = vector.load %arg17[%105, %c0_66] : memref<8x16xf32, #tpu.memory_space<vmem>>, vector<1x16xf32>
      %107 = arith.index_cast %100 : i32 to index
      %c0_67 = arith.constant 0 : index
      %108 = vector.load %arg18[%107, %c0_67] : memref<8x16xf32, #tpu.memory_space<vmem>>, vector<1x16xf32>
      %109 = vector.broadcast %102 : vector<1x64xf32> to vector<16x64xf32>
      %110 = arith.mulf %109, %69 : vector<16x64xf32>
      %111 = math.exp %110 : vector<16x64xf32>
      %112 = vector.broadcast %106 : vector<1x16xf32> to vector<16x16xf32>
      %113 = arith.mulf %74, %112 : vector<16x16xf32>
      %114 = vector.shape_cast %104 : vector<1x64xf32> to vector<1x64xf32>
      %115 = vector.broadcast %114 : vector<1x64xf32> to vector<16x64xf32>
      %cst_68 = arith.constant dense<0.000000e+00> : vector<16x64xf32>
      %116 = tpu.matmul %113, %115, %cst_68 {dimension_numbers = #tpu.dot_dimension_numbers<[1], [0], [0], [1], [0, 0, 1, 1], [], []>} : vector<16x16xf32>, vector<16x64xf32>, vector<16x64xf32> -> vector<16x64xf32>
      %117 = arith.mulf %111, %arg21 : vector<16x64xf32>
      %118 = arith.addf %117, %116 : vector<16x64xf32>
      %cst_69 = arith.constant dense<0.000000e+00> : vector<1x64xf32>
      %119 = tpu.matmul %108, %118, %cst_69 {dimension_numbers = #tpu.dot_dimension_numbers<[1], [0], [0], [1], [0, 0, 1, 1], [], []>} : vector<1x16xf32>, vector<16x64xf32>, vector<1x64xf32> -> vector<1x64xf32>
      %120 = arith.index_cast %100 : i32 to index
      %c0_70 = arith.constant 0 : index
      %121 = vector.load %arg19[%120, %c0_70] : memref<8x64xf32, #tpu.memory_space<vmem>>, vector<1x64xf32>
      tpu.vector_store %arg19[%120, %c0_70], %119 {strides = array<i32>} : memref<8x64xf32, #tpu.memory_space<vmem>>, vector<1x64xf32>,
      %c1_i32_71 = arith.constant 1 : i32
      %122 = arith.addi %99, %c1_i32_71 : i32
      %123 = arith.index_cast %122 : i32 to index
      %c0_72 = arith.constant 0 : index
      %124 = vector.load %arg15[%123, %c0_72] : memref<8x64xf32, #tpu.memory_space<vmem>>, vector<1x64xf32>
      %125 = arith.index_cast %122 : i32 to index
      %c0_73 = arith.constant 0 : index
      %126 = vector.load %arg16[%125, %c0_73] : memref<8x64xf32, #tpu.memory_space<vmem>>, vector<1x64xf32>
      %127 = arith.index_cast %122 : i32 to index
      %c0_74 = arith.constant 0 : index
      %128 = vector.load %arg17[%127, %c0_74] : memref<8x16xf32, #tpu.memory_space<vmem>>, vector<1x16xf32>
      %129 = arith.index_cast %122 : i32 to index
      %c0_75 = arith.constant 0 : index
      %130 = vector.load %arg18[%129, %c0_75] : memref<8x16xf32, #tpu.memory_space<vmem>>, vector<1x16xf32>
      %131 = vector.broadcast %124 : vector<1x64xf32> to vector<16x64xf32>
      %132 = arith.mulf %131, %69 : vector<16x64xf32>
      %133 = math.exp %132 : vector<16x64xf32>
      %134 = vector.broadcast %128 : vector<1x16xf32> to vector<16x16xf32>
      %135 = arith.mulf %74, %134 : vector<16x16xf32>
      %136 = vector.shape_cast %126 : vector<1x64xf32> to vector<1x64xf32>
      %137 = vector.broadcast %136 : vector<1x64xf32> to vector<16x64xf32>
      %cst_76 = arith.constant dense<0.000000e+00> : vector<16x64xf32>
      %138 = tpu.matmul %135, %137, %cst_76 {dimension_numbers = #tpu.dot_dimension_numbers<[1], [0], [0], [1], [0, 0, 1, 1], [], []>} : vector<16x16xf32>, vector<16x64xf32>, vector<16x64xf32> -> vector<16x64xf32>
      %139 = arith.mulf %133, %118 : vector<16x64xf32>
      %140 = arith.addf %139, %138 : vector<16x64xf32>
      %cst_77 = arith.constant dense<0.000000e+00> : vector<1x64xf32>
      %141 = tpu.matmul %130, %140, %cst_77 {dimension_numbers = #tpu.dot_dimension_numbers<[1], [0], [0], [1], [0, 0, 1, 1], [], []>} : vector<1x16xf32>, vector<16x64xf32>, vector<1x64xf32> -> vector<1x64xf32>
      %142 = arith.index_cast %122 : i32 to index
      %c0_78 = arith.constant 0 : index
      %143 = vector.load %arg19[%142, %c0_78] : memref<8x64xf32, #tpu.memory_space<vmem>>, vector<1x64xf32>
      tpu.vector_store %arg19[%142, %c0_78], %141 {strides = array<i32>} : memref<8x64xf32, #tpu.memory_space<vmem>>, vector<1x64xf32>,
      %c2_i32_79 = arith.constant 2 : i32
      %144 = arith.addi %99, %c2_i32_79 : i32
      %145 = arith.index_cast %144 : i32 to index
      %c0_80 = arith.constant 0 : index
      %146 = vector.load %arg15[%145, %c0_80] : memref<8x64xf32, #tpu.memory_space<vmem>>, vector<1x64xf32>
      %147 = arith.index_cast %144 : i32 to index
      %c0_81 = arith.constant 0 : index
      %148 = vector.load %arg16[%147, %c0_81] : memref<8x64xf32, #tpu.memory_space<vmem>>, vector<1x64xf32>
      %149 = arith.index_cast %144 : i32 to index
      %c0_82 = arith.constant 0 : index
      %150 = vector.load %arg17[%149, %c0_82] : memref<8x16xf32, #tpu.memory_space<vmem>>, vector<1x16xf32>
      %151 = arith.index_cast %144 : i32 to index
      %c0_83 = arith.constant 0 : index
      %152 = vector.load %arg18[%151, %c0_83] : memref<8x16xf32, #tpu.memory_space<vmem>>, vector<1x16xf32>
      %153 = vector.broadcast %146 : vector<1x64xf32> to vector<16x64xf32>
      %154 = arith.mulf %153, %69 : vector<16x64xf32>
      %155 = math.exp %154 : vector<16x64xf32>
      %156 = vector.broadcast %150 : vector<1x16xf32> to vector<16x16xf32>
      %157 = arith.mulf %74, %156 : vector<16x16xf32>
      %158 = vector.shape_cast %148 : vector<1x64xf32> to vector<1x64xf32>
      %159 = vector.broadcast %158 : vector<1x64xf32> to vector<16x64xf32>
      %cst_84 = arith.constant dense<0.000000e+00> : vector<16x64xf32>
      %160 = tpu.matmul %157, %159, %cst_84 {dimension_numbers = #tpu.dot_dimension_numbers<[1], [0], [0], [1], [0, 0, 1, 1], [], []>} : vector<16x16xf32>, vector<16x64xf32>, vector<16x64xf32> -> vector<16x64xf32>
      %161 = arith.mulf %155, %140 : vector<16x64xf32>
      %162 = arith.addf %161, %160 : vector<16x64xf32>
      %cst_85 = arith.constant dense<0.000000e+00> : vector<1x64xf32>
      %163 = tpu.matmul %152, %162, %cst_85 {dimension_numbers = #tpu.dot_dimension_numbers<[1], [0], [0], [1], [0, 0, 1, 1], [], []>} : vector<1x16xf32>, vector<16x64xf32>, vector<1x64xf32> -> vector<1x64xf32>
      %164 = arith.index_cast %144 : i32 to index
      %c0_86 = arith.constant 0 : index
      %165 = vector.load %arg19[%164, %c0_86] : memref<8x64xf32, #tpu.memory_space<vmem>>, vector<1x64xf32>
      tpu.vector_store %arg19[%164, %c0_86], %163 {strides = array<i32>} : memref<8x64xf32, #tpu.memory_space<vmem>>, vector<1x64xf32>,
      %c3_i32 = arith.constant 3 : i32
      %166 = arith.addi %99, %c3_i32 : i32
      %167 = arith.index_cast %166 : i32 to index
      %c0_87 = arith.constant 0 : index
      %168 = vector.load %arg15[%167, %c0_87] : memref<8x64xf32, #tpu.memory_space<vmem>>, vector<1x64xf32>
      %169 = arith.index_cast %166 : i32 to index
      %c0_88 = arith.constant 0 : index
      %170 = vector.load %arg16[%169, %c0_88] : memref<8x64xf32, #tpu.memory_space<vmem>>, vector<1x64xf32>
      %171 = arith.index_cast %166 : i32 to index
      %c0_89 = arith.constant 0 : index
      %172 = vector.load %arg17[%171, %c0_89] : memref<8x16xf32, #tpu.memory_space<vmem>>, vector<1x16xf32>
      %173 = arith.index_cast %166 : i32 to index
      %c0_90 = arith.constant 0 : index
      %174 = vector.load %arg18[%173, %c0_90] : memref<8x16xf32, #tpu.memory_space<vmem>>, vector<1x16xf32>
      %175 = vector.broadcast %168 : vector<1x64xf32> to vector<16x64xf32>
      %176 = arith.mulf %175, %69 : vector<16x64xf32>
      %177 = math.exp %176 : vector<16x64xf32>
      %178 = vector.broadcast %172 : vector<1x16xf32> to vector<16x16xf32>
      %179 = arith.mulf %74, %178 : vector<16x16xf32>
      %180 = vector.shape_cast %170 : vector<1x64xf32> to vector<1x64xf32>
      %181 = vector.broadcast %180 : vector<1x64xf32> to vector<16x64xf32>
      %cst_91 = arith.constant dense<0.000000e+00> : vector<16x64xf32>
      %182 = tpu.matmul %179, %181, %cst_91 {dimension_numbers = #tpu.dot_dimension_numbers<[1], [0], [0], [1], [0, 0, 1, 1], [], []>} : vector<16x16xf32>, vector<16x64xf32>, vector<16x64xf32> -> vector<16x64xf32>
      %183 = arith.mulf %177, %162 : vector<16x64xf32>
      %184 = arith.addf %183, %182 : vector<16x64xf32>
      %cst_92 = arith.constant dense<0.000000e+00> : vector<1x64xf32>
      %185 = tpu.matmul %174, %184, %cst_92 {dimension_numbers = #tpu.dot_dimension_numbers<[1], [0], [0], [1], [0, 0, 1, 1], [], []>} : vector<1x16xf32>, vector<16x64xf32>, vector<1x64xf32> -> vector<1x64xf32>
      %186 = arith.index_cast %166 : i32 to index
      %c0_93 = arith.constant 0 : index
      %187 = vector.load %arg19[%186, %c0_93] : memref<8x64xf32, #tpu.memory_space<vmem>>, vector<1x64xf32>
      tpu.vector_store %arg19[%186, %c0_93], %185 {strides = array<i32>} : memref<8x64xf32, #tpu.memory_space<vmem>>, vector<1x64xf32>,
      scf.yield %184 : vector<16x64xf32>
    }
    %c2_i32_48 = arith.constant 2 : i32
    %c0_49 = arith.constant 0 : index
    %c0_50 = arith.constant 0 : index
    %78 = vector.load %arg13[%c0_49, %c0_50] : memref<16x64xf32, #tpu.memory_space<vmem>>, vector<16x64xf32>
    tpu.vector_store %arg13[%c0_49, %c0_50], %77 {strides = array<i32>} : memref<16x64xf32, #tpu.memory_space<vmem>>, vector<16x64xf32>,
    %c0_51 = arith.constant 0 : index
    %c0_52 = arith.constant 0 : index
    %79 = vector.load %arg19[%c0_51, %c0_52] : memref<8x64xf32, #tpu.memory_space<vmem>>, vector<8x64xf32>
    %c0_53 = arith.constant 0 : index
    %c0_54 = arith.constant 0 : index
    %80 = vector.load %arg10[%c0_53, %c0_54] : memref<1x64xf32, #tpu.memory_space<vmem>>, vector<1x64xf32>
    %81 = vector.broadcast %80 : vector<1x64xf32> to vector<8x64xf32>
    %82 = arith.mulf %43, %81 : vector<8x64xf32>
    %83 = arith.addf %79, %82 : vector<8x64xf32>
    %cst_55 = arith.constant 0.000000e+00 : f32
    %84 = vector.broadcast %cst_55 : f32 to vector<8x64xf32>
    %85 = arith.subf %84, %9 : vector<8x64xf32>
    %86 = math.exp %85 : vector<8x64xf32>
    %cst_56 = arith.constant 1.000000e+00 : f32
    %87 = vector.broadcast %cst_56 : f32 to vector<8x64xf32>
    %88 = arith.addf %87, %86 : vector<8x64xf32>
    %89 = tpu.reciprocal %88 {approx = true} : vector<8x64xf32> -> vector<8x64xf32>
    %90 = arith.mulf %9, %89 : vector<8x64xf32>
    %91 = arith.mulf %83, %90 : vector<8x64xf32>
    %92 = arith.truncf %91 : vector<8x64xf32> to vector<8x64xbf16>
    %c0_57 = arith.constant 0 : index
    %c0_58 = arith.constant 0 : index
    %93 = vector.load %arg11[%c0_57, %c0_58] : memref<64x32xbf16, #tpu.memory_space<vmem>>, vector<64x32xbf16>
    %cst_59 = arith.constant dense<0.000000e+00> : vector<8x32xf32>
    %94 = tpu.matmul %92, %93, %cst_59 {dimension_numbers = #tpu.dot_dimension_numbers<[1], [0], [0], [1], [0, 0, 1, 1], [], []>} : vector<8x64xbf16>, vector<64x32xbf16>, vector<8x32xf32> -> vector<8x32xf32>
    %c0_60 = arith.constant 0 : index
    %c0_61 = arith.constant 0 : index
    %c0_62 = arith.constant 0 : index
    %95 = vector.load %arg12[%c0_60, %c0_61, %c0_62] : memref<1x8x32xf32, #tpu.memory_space<vmem>>, vector<1x8x32xf32>
    %96 = vector.shape_cast %95 : vector<1x8x32xf32> to vector<8x32xf32>
    %97 = vector.shape_cast %94 : vector<8x32xf32> to vector<1x8x32xf32>
    tpu.vector_store %arg12[%c0_60, %c0_61, %c0_62], %97 {strides = array<i32>} : memref<1x8x32xf32, #tpu.memory_space<vmem>>, vector<1x8x32xf32>,
    return
  }
  func.func @transform_0(%arg0: i32, %arg1: i32) -> (i32, i32, i32) {
    %c0_i32 = arith.constant 0 : i32
    %c0_i32_0 = arith.constant 0 : i32
    return %arg0, %arg1, %c0_i32 : i32, i32, i32
  }
  func.func @transform_1(%arg0: i32, %arg1: i32) -> (i32, i32) {
    %c0_i32 = arith.constant 0 : i32
    %c0_i32_0 = arith.constant 0 : i32
    %c0_i32_1 = arith.constant 0 : i32
    return %c0_i32, %c0_i32_0 : i32, i32
  }
  func.func @transform_2(%arg0: i32, %arg1: i32) -> (i32, i32) {
    %c0_i32 = arith.constant 0 : i32
    %c0_i32_0 = arith.constant 0 : i32
    %c0_i32_1 = arith.constant 0 : i32
    return %c0_i32, %c0_i32_0 : i32, i32
  }
  func.func @transform_3(%arg0: i32, %arg1: i32) -> (i32, i32) {
    %c0_i32 = arith.constant 0 : i32
    %c0_i32_0 = arith.constant 0 : i32
    %c0_i32_1 = arith.constant 0 : i32
    return %c0_i32, %c0_i32_0 : i32, i32
  }
  func.func @transform_4(%arg0: i32, %arg1: i32) -> (i32, i32) {
    %c0_i32 = arith.constant 0 : i32
    %c0_i32_0 = arith.constant 0 : i32
    %c0_i32_1 = arith.constant 0 : i32
    return %c0_i32, %c0_i32_0 : i32, i32
  }
  func.func @transform_5(%arg0: i32, %arg1: i32) -> (i32, i32) {
    %c0_i32 = arith.constant 0 : i32
    %c0_i32_0 = arith.constant 0 : i32
    %c0_i32_1 = arith.constant 0 : i32
    return %c0_i32, %c0_i32_0 : i32, i32
  }
  func.func @transform_6(%arg0: i32, %arg1: i32) -> (i32, i32) {
    %c0_i32 = arith.constant 0 : i32
    %c0_i32_0 = arith.constant 0 : i32
    %c0_i32_1 = arith.constant 0 : i32
    return %c0_i32, %c0_i32_0 : i32, i32
  }
  func.func @transform_7(%arg0: i32, %arg1: i32) -> (i32, i32) {
    %c0_i32 = arith.constant 0 : i32
    %c0_i32_0 = arith.constant 0 : i32
    %c0_i32_1 = arith.constant 0 : i32
    return %c0_i32, %c0_i32_0 : i32, i32
  }
  func.func @transform_8(%arg0: i32, %arg1: i32) -> (i32, i32) {
    %c0_i32 = arith.constant 0 : i32
    %c0_i32_0 = arith.constant 0 : i32
    %c0_i32_1 = arith.constant 0 : i32
    return %c0_i32, %c0_i32_0 : i32, i32
  }
  func.func @transform_9(%arg0: i32, %arg1: i32) -> (i32, i32) {
    %c0_i32 = arith.constant 0 : i32
    %c0_i32_0 = arith.constant 0 : i32
    %c0_i32_1 = arith.constant 0 : i32
    return %c0_i32, %c0_i32_0 : i32, i32
  }
  func.func @transform_10(%arg0: i32, %arg1: i32) -> (i32, i32, i32) {
    %c0_i32 = arith.constant 0 : i32
    %c0_i32_0 = arith.constant 0 : i32
    return %arg0, %arg1, %c0_i32 : i32, i32, i32
  }
}

</mosaic_0001>

<bundles_post_ra>
// kernel: tpu_custom_call.1
= control target key start
LH: loop header
LB: loop body
LE: loop exit
PB: predicated region body
PF: predicated region fallthrough
CT: control target
= control target key end

     0   :  { %15 = vsyncpa [#allocation10], 0  ;;  %s2650_s0 = inlined_call_operand.vmem [shape: f32[2,16,32], index: 0, kind: input, shape index: {}]   ;;  %s2651_s1 = inlined_call_operand.vmem [shape: bf16[32,128], index: 1, kind: input, shape index: {}]   ;;  %s2652_s2 = inlined_call_operand.vmem [shape: f32[4,64], index: 2, kind: input, shape index: {}]   ;;  %s2653_s3 = inlined_call_operand.vmem [shape: f32[1,64], index: 3, kind: input, shape index: {}]   ;;  %s2654_s4 = inlined_call_operand.vmem [shape: bf16[64,34], index: 4, kind: input, shape index: {}]   ;;  %s2655_s5 = inlined_call_operand.vmem [shape: f32[2,64], index: 5, kind: input, shape index: {}]   ;;  %s2656_s6 = inlined_call_operand.vmem [shape: f32[1,64], index: 6, kind: input, shape index: {}]   ;;  %s2657_s7 = inlined_call_operand.vmem [shape: f32[16,64], index: 7, kind: input, shape index: {}]   ;;  %s2658_s8 = inlined_call_operand.vmem [shape: f32[1,64], index: 8, kind: input, shape index: {}]   ;;  %s2659_s9 = inlined_call_operand.vmem [shape: bf16[64,32], index: 9, kind: input, shape index: {}]   ;;  %s2660_s10 = inlined_call_operand.hbm [shape: f32[2,16,32], index: 10, kind: output, shape index: {}]  }
   0x1   :  { %17 = vsyncpa [#allocation10 + $0x1], 0  ;;  %s2312_s13 = smov 0   ;;  %s2314_s14 = smov 0  }
   0x2   :  { %s2316_s15 = smov 0   ;;  %s2318_s16 = smov 0  }
   0x3   :  { %s2320_s17 = smov 0   ;;  %s2322_s18 = smov 0  }
   0x4   :  { %s2324_s19 = smov 0   ;;  %s2326_s20 = smov 0  }
   0x5 LB: > { %2666 = sst [smem:[#allocation12_spill]] %s2225_s18  ;;  %s1728_s21 = sadd.s32 4294967295, %s2233_s20   ;;  %s2233_s20 = sphi %s2326_s20, %s23_s20   ;;  %s2229_s19 = sphi %s2324_s19, %s2678_s19   ;;  %s2225_s18 = sphi %s2322_s18, %s2677_s18   ;;  %s2221_s17 = sphi %s2320_s17, %s2676_s17   ;;  %s2217_s16 = sphi %s2318_s16, %s2675_s16   ;;  %s2213_s15 = sphi %s2316_s15, %s2681_s15   ;;  %s2209_s14 = sphi %s2314_s14, %s2680_s14   ;;  %s2205_s13 = sphi %s2312_s13, %s2679_s13  }
   0x6   : > { %2667 = sst [smem:[#allocation13_spill]] %s2229_s19  ;;  %s1729_s22 = sadd.s32 4294967294, %s2233_s20  }
   0x7   : > { %s32_s23 = sadd.s32 1, %s2225_s18  ;;  %s35_s24 = sadd.s32 1, %s2229_s19 }
   0x8   : > { %p33_p0 = scmp.ge.s32.totalorder %s32_s23, 2  ;;  %p271_p1 = scmp.ne.s32.totalorder %s2213_s15, %s2209_s14 }
   0x9   : > { %p272_p2 = scmp.eq.s32.totalorder %s1728_s21, 3  ;;  %p277_p5 = scmp.ne.s32.totalorder %s2209_s14, %s2205_s13 }
   0xa   : > { %s2683_s23 = smov (%p33_p0, %s32_s23), 0  ;;  %s2685_s24 = smov (!%p33_p0, %s35_s24), %s2229_s19 }
   0xb   : > { %2668 = sst [smem:[#allocation14_spill]] %s2683_s23  ;;  %s257_s25 = ssub.s32 %s2225_s18, %s2683_s23 }
   0xc   : > { %p2363_p3 = por %p272_p2, %p271_p1  ;;  %p37_p4 = scmp.ge.s32.totalorder %s2685_s24, 2 }
   0xd   : > { %p278_p6 = scmp.eq.s32.totalorder %s1729_s22, 3  ;;  %p1732_p7 = scmp.ge.s32.totalorder %s2233_s20, 1 }
   0xe   : > { %s2687_s24 = smov (%p37_p4, %s2685_s24), 0  ;;  %p334_p9 = scmp.lt.s32.totalorder %s2233_s20, 5 }
   0xf   : > { %2670 = sst [smem:[#allocation15_spill]] %s2687_s24  ;;  %p2372_p8 = por %p278_p6, %p277_p5 }
  0x10   : > { %s256_s28 = ssub.s32 %s2229_s19, %s2687_s24  ;;  %s261_s29 = sadd.s32 1, %s2213_s15 }
  0x11   : > { %s258_s30 = sor.u32 %s257_s25, %s256_s28  ;;  %p335_p10 = pnand %p1732_p7, %p334_p9 }
  0x12   : > { %p259_p11 = scmp.eq.s32.totalorder %s258_s30, 0  ;;  %s2665_s12 = sand.u32 (!%p335_p10), 1, %s2209_s14  }
  0x13   : > { %338 = sbr.rel (%p335_p10) target bundleno = 1570 (0x622), region = 60  ;;  %p375_p12 = scmp.lt.s32.totalorder (!%p335_p10), %s2221_s17, 1 }
  0x14   : > { %s2381_s11 = scalar_select %p259_p11, %s2213_s15, %s261_s29  }
  0x15   : > { %s2387_s21 = sshll.u32 (!%p335_p10), %s2665_s12, 3  ;;  %p377_p13 = scmp.lt.s32.totalorder (!%p335_p10), %s2217_s16, 1 }
  0x16   : > { %s374_s18 = scalar_lea.vmem (!%p335_p10), [#allocation9], %s2387_s21  ;;  %p1736_p0 = scmp.ne.s32.totalorder (!%p335_p10), %s2217_s16, 0 }
  0x1a   : > { %s376_s22 = scalar_select %p375_p12, %s2221_s17, 1 }
  0x1b   : > { %s378_s25 = scalar_select %p377_p13, %s2217_s16, 1 }
  0x1c   : > { %s1734_s28 = sshll.u32 %s376_s22, 1  ;;  %387 = sbr.rel (%p1736_p0) target bundleno = 35 (0x23), region = 64  ;;  %vm388_vm0 = vcmask (!%p1736_p0), 523264   ;;  %v2247_v0 = vmov (!%p1736_p0), 0.0  }
  0x1d   : > { %s380_s30 = sadd.s32 %s1734_s28, %s378_s25  ;;  %389 = vst.msk [vmem:[#allocation2] sm:$0xff] (!%p1736_p0), %vm388_vm0, %v2247_v0  ;;  %390 = vst.msk [vmem:[#allocation2 + $0x8] sm:$0xff] (!%p1736_p0), %vm388_vm0, %v2247_v0 }
  0x1e   : > { %s1735_s29 = sshll.u32 %s380_s30, 3  ;;  %391 = vst.msk [vmem:[#allocation3] sm:$0xff] (!%p1736_p0), %vm388_vm0, %v2247_v0  ;;  %392 = vst.msk [vmem:[#allocation3 + $0x8] sm:$0xff] (!%p1736_p0), %vm388_vm0, %v2247_v0 }
  0x1f   : > { %s382_s19 = scalar_lea.vmem %s2650_s0, %s1735_s29 }
  0x23 PF: > { %v690_v1 = vlaneseq  ;;  %v2089_v2 = vld [vmem:[%s2651_s1] sm:$0xff]   ;;  %v2248_v3 = vmov 0.0   ;;  %v2090_v6 = vld [vmem:[%s2651_s1 + $0x8] sm:$0xff]   ;;  %vm2249_vm1 = vmmov 0   ;;  %vm411_vm4 = vcmask 261120   ;;  %v2093_v14 = vld [vmem:[%s2654_s4 + $0x10] sm:$0xff]  }
  0x24   : > { %1864 = vmatprep.subr.bf16.mxu0 %v2248_v3  ;;  %1872 = vmatprep.subr.bf16.mxu1 %v2248_v3  ;;  %v393_v7 = vld [vmem:[%s382_s19] sm:$0xff]  ;;  %v2092_v13 = vld [vmem:[%s2654_s4 + $0x8] sm:$0xff]   ;;  %v2094_v15 = vld [vmem:[%s2654_s4 + $0x18] sm:$0xff]   ;;  %vm603_vm5 = vcmask 1041408   ;;  %vm455_vm6 = vcmask 523264   ;;  %vm498_vm7 = vcmask 518144  }
  0x25   : > { %v691_v4 = vshrl.u32 %v690_v1, 7  ;;  %v694_v5 = vand.u32 127, %v690_v1  ;;  %1865 = vmatpush3.bf16.msra.mxu0 %v2089_v2  ;;  %1868 = vmatprep.mubr.msk.bf16.mxu0 %vm2249_vm1, %v2248_v3  ;;  %v394_v10 = vpack.c.bf16 %v393_v7, %v393_v7  ;;  %v2091_v12 = vld [vmem:[%s2654_s4] sm:$0xff]   ;;  %vm600_vm8 = vcmask 15360   ;;  %s2250_s25 = smov 126   ;;  %s2251_s28 = smov 110  }
  0x26   : > { %1866 = vmatprep.subr.bf16.mxu0 %v2248_v3  ;;  %1880 = vmatprep.mubr.msk.bf16.mxu1 %vm2249_vm1, %v2248_v3  ;;  %v592_v16 = vld [vmem:[%s2655_s5] sm:$0x3]  ;;  %v1743_v29 = vld [vmem:[%s2652_s2 + $0x2] ss:$0 sm:$0xff]  ;;  %v1744_v33 = vld [vmem:[%s2652_s2 + $0x3] ss:$0 sm:$0xff] }
  0x27   : > { %v692_v8 = vadd.s32 8, %v691_v4  ;;  %vm695_vm2 = vcmp.eq.s32.totalorder %v691_v4, %v694_v5  ;;  %1873 = vmatpush3.bf16.msra.mxu1 %v2091_v12  ;;  %v1741_v21 = vld [vmem:[%s2652_s2] ss:$0 sm:$0xff]  ;;  %v1742_v23 = vld [vmem:[%s2652_s2 + $0x1] ss:$0 sm:$0xff]  ;;  %vm586_vm9 = vcmask 130048  }
  0x28   : > { %v2411_v9 = vsel %vm695_vm2, 1.0, %v2248_v3  ;;  %1874 = vmatprep.subr.bf16.mxu1 %v2248_v3  ;;  %v1740_v22 = vld [vmem:[%s2653_s3] ss:$0 sm:$0xff]  ;;  %v2472_v53 = vld [vmem:[%s2657_s7 + $0x8] sm:$0xff]  ;;  %s2484_s12 = smov 0  }
  0x29   : > { %vm696_vm3 = vcmp.eq.s32.totalorder %v692_v8, %v694_v5  ;;  %1867 = vmatpush3.bf16.msra.mxu0 %v2090_v6  ;;  %v2467_v52 = vld [vmem:[%s2657_s7] sm:$0xff]  ;;  %v702_v55 = vld [vmem:[#allocation2 + $0x8] sm:$0xff]  }
  0x2a   : > { %v2414_v11 = vsel %vm696_vm3, 1.0, %v2248_v3  ;;  %1884 = vmatprep.subr.mxu0 %v2248_v3  ;;  %v701_v54 = vld [vmem:[#allocation2] sm:$0xff]  }
  0x2b   : > { %1875 = vmatpush3.bf16.msra.mxu1 %v2092_v13  ;;  %v1750_v56 = vld [vmem:[%s2656_s6] ss:$0 sm:$0xff] }
  0x2c   : > { %1869 = vmatmul.mubr.msk.bf16.vlgmr.msra.gmra.mrb[0].mxu0 %vm411_vm4, %v394_v10  ;;  %1876 = vmatprep.subr.bf16.mxu1 %v2248_v3 }
  0x2d   : > { %1886 = vmatprep.mubr.msk.f32.mxu0 %vm2249_vm1, %v2248_v3  ;;  %1885 = vmatpush3.msk.msra.mxu0 %vm603_vm5, %v592_v16 }
  0x2f   : > { %1877 = vmatpush3.bf16.msra.mxu1 %v2093_v14 }
  0x30   : > { %1878 = vmatprep.subr.bf16.mxu1 %v2248_v3 }
  0x33   : > { %1879 = vmatpush3.bf16.msra.mxu1 %v2094_v15 }
  0xff   : > { %v2438_v17 = vpop.f32.mrb[0].mxu0 }
 0x100   : > { %456 = vst.msk [vmem:[#allocation3 + $0x8] sm:$0xff] %vm455_vm6, %v2438_v17  ;;  %v1870_v18 = vpop.f32.mrb[1].mxu0 }
 0x101   : > { %v452_v19 = vpop.f32.mrb[2].mxu0 }
 0x102   : > { %v1871_v20 = vpop.f32.mrb[3].mxu0 }
 0x107   : > { %v465_v24 = vld [vmem:[#allocation3 + $0x5] sm:$0xff]  ;;  %v497_v28 = vld [vmem:[#allocation3 + $0xd] sm:$0x7] }
 0x108   : > { %v473_v25 = vld [vmem:[#allocation3 + $0x6] sm:$0xff]  ;;  %v471_v27 = vmul.f32 %v1741_v21, %v465_v24 }
 0x109   : > { %v481_v26 = vld [vmem:[#allocation3 + $0x7] sm:$0xff]  ;;  %v479_v31 = vmul.f32 %v1742_v23, %v473_v25 }
 0x10a   : > { %499 = vst.msk [vmem:[#allocation3 + $0x5] sm:$0x7] %vm498_vm7, %v497_v28  ;;  %v472_v30 = vadd.f32 %v1740_v22, %v471_v27  ;;  %v489_v32 = vld [vmem:[#allocation3 + $0x8] sm:$0xff]  ;;  %v487_v35 = vmul.f32 %v1743_v29, %v481_v26 }
 0x10b   : > { %v495_v37 = vmul.f32 %v1744_v33, %v489_v32 }
 0x10c   : > { %v480_v34 = vadd.f32 %v479_v31, %v472_v30 }
 0x10e   : > { %v488_v36 = vadd.f32 %v487_v35, %v480_v34 }
 0x110   : > { %v496_v38 = vadd.f32 %v495_v37, %v488_v36 }
 0x112   : > { %v500_v39 = vsub.f32 0.0, %v496_v38 }
 0x114   : > { %v501_v40 = vmul.f32 1.442695, %v500_v39 }
 0x116   : > { %2095 = vpow2.f32 %v501_v40 }
 0x120   : > { %v2096_v41 = vpop.eup %2095 }
 0x121   : > { %v503_v42 = vadd.f32 1.0, %v2096_v41 }
 0x123   : > { %2097 = vrcp.f32 %v503_v42 }
 0x12d   : > { %v2098_v43 = vpop.eup %2097 }
 0x12e   : > { %v2457_v44 = vmul.f32 %v2098_v43, %v496_v38 }
 0x130   : > { %v506_v45 = vpack.c.bf16 %v2457_v44, %v2457_v44 }
 0x132   : > { %1881 = vmatmul.mubr.msk.bf16.vlgmr.msra.gmra.mrb[0].mxu1 %vm455_vm6, %v506_v45 }
 0x205   : > { %v576_v46 = vpop.f32.mrb[0].mxu1 }
 0x206   : > { %583 = vrot.lane.b32.xlu0 %v576_v46, %s2250_s25  ;;  %v1882_v47 = vpop.f32.mrb[1].mxu1  ;;  %1887 = vmatmul.mubr.msk.f32.vlgmr.msra.gmra.mrb[4].mxu0 %vm600_vm8, %v576_v46 }
 0x207   : > { %v579_v48 = vpop.f32.mrb[2].mxu1 }
 0x208   : > { %v1883_v49 = vpop.f32.mrb[3].mxu1 }
 0x20a   : > { %588 = vrot.lane.b32.xlu0 %v576_v46, %s2251_s28 }
 0x278   : > { %v584_v50 = vpop.permute.xlu0 %583 }
 0x279   : > { %587 = vst.msk [vmem:[#allocation6] sm:$0xff] %vm586_vm9, %v584_v50 }
 0x27c   : > { %v589_v51 = vpop.permute.xlu0 %588 }
 0x27d   : > { %591 = vst.msk [vmem:[#allocation7] sm:$0xff] %vm586_vm9, %v589_v51 }
 0x2d9   : > { %v673_v57 = vpop.f32.mrb[4].mxu0 }
 0x2da   : > { %v674_v58 = vadd.f32 %v1750_v56, %v673_v57  ;;  %v1888_v59 = vpop.f32.mrb[5].mxu0 }
 0x2dc   : > { %v678_v60 = vmin.f32 %v674_v58, 20.0  ;;  %vm677_vm10 = vcmp.gt.f32.partialorder %v674_v58, 20.0 }
 0x2de   : > { %v679_v61 = vmul.f32 1.442695, %v678_v60 }
 0x2e0   : > { %2099 = vpow2.f32 %v679_v61 }
 0x2ea   : > { %v2100_v62 = vpop.eup %2099 }
 0x2eb   : > { %v681_v63 = vadd.f32 1.0, %v2100_v62 }
 0x2ed   : > { %2101 = vlog2.f32 %v681_v63 }
 0x2f7   : > { %v2102_v0 = vpop.eup %2101 }
 0x2f8   : > { %v683_v1 = vmul.f32 0.6931472, %v2102_v0 }
 0x2fa   : > { %v684_v2 = vsel %vm677_vm10, %v674_v58, %v683_v1 }
 0x2fb   : > { %685 = vst.msk [vmem:[#allocation4] sm:$0xff] %vm455_vm6, %v684_v2  ;;  %v686_v4 = vmul.f32 %v684_v2, %v2457_v44 }
 0x2fd   : > { %687 = vst.msk [vmem:[#allocation5] sm:$0xff] %vm455_vm6, %v686_v4 }
 0x2fe LB: >> { %s2496_s25 = sshll.u32 %s2245_s12, 2  ;;  %v2252_v28 = vmov 0.0|0.0   ;;  %vm2253_vm11 = vmmov 0   ;;  %v2254_v29 = vmov 0.0   ;;  %vm899_vm12 = vcmask 516096   ;;  %s708_s12 = sadd.s32 1, %s2245_s12   ;;  %s2245_s12 = sphi %s2484_s12, %s708_s12   ;;  %v2241_v54 = vphi %v701_v54, %v2673_v54   ;;  %v2237_v55 = vphi %v702_v55, %v2672_v55  }
 0x2ff   : >> { %s714_s28 = scalar_lea.vmem [#allocation5], %s2496_s25  ;;  %s716_s30 = scalar_lea.vmem [#allocation6], %s2496_s25  ;;  %1961 = vmatprep.subr.bf16.mxu1 %v2252_v28  ;;  %1900 = vmatprep.mubr.msk.f32.mxu1 %vm2253_vm11, %v2254_v29 }
 0x300   : >> { %v1757_v8 = vld [vmem:[%s716_s30] ss:$0 sm:$0xff]  ;;  %v1771_v12 = vld [vmem:[%s716_s30 + $0x1] ss:$0 sm:$0xff]  ;;  %v1787_v19 = vld [vmem:[%s716_s30 + $0x2] ss:$0 sm:$0xff] }
 0x301   : >> { %v734_v13 = vmul.f32 %v1757_v8, %v2411_v9  ;;  %v735_v15 = vmul.f32 %v1757_v8, %v2414_v11  ;;  %v924_v16 = vmul.f32 %v1771_v12, %v2411_v9  ;;  %v925_v21 = vmul.f32 %v1771_v12, %v2414_v11  ;;  %v1803_v24 = vld [vmem:[%s716_s30 + $0x3] ss:$0 sm:$0xff]  ;;  %s712_s29 = scalar_lea.vmem [#allocation4], %s2496_s25  ;;  %s2531_s22 = scalar_lea.vmem [#allocation7], %s2496_s25 }
 0x302   : >> { %v1113_v22 = vmul.f32 %v1787_v19, %v2411_v9  ;;  %v1114_v25 = vmul.f32 %v1787_v19, %v2414_v11  ;;  %v1302_v26 = vmul.f32 %v1803_v24, %v2411_v9  ;;  %v1303_v27 = vmul.f32 %v1803_v24, %v2414_v11  ;;  %v1756_v30 = vld [vmem:[%s712_s29] ss:$0 sm:$0xff]  ;;  %v1770_v33 = vld [vmem:[%s712_s29 + $0x1] ss:$0 sm:$0xff]  ;;  %v1786_v38 = vld [vmem:[%s712_s29 + $0x2] ss:$0 sm:$0xff] }
 0x303   : >> { %1893 = vmatprep.mubr.msk.f32.mxu0 %vm586_vm9, %v734_v13  ;;  %v725_v31 = vmul.f32 %v1756_v30, %v2472_v53  ;;  %v724_v32 = vmul.f32 %v1756_v30, %v2467_v52  ;;  %v915_v36 = vmul.f32 %v1770_v33, %v2472_v53  ;;  %v914_v37 = vmul.f32 %v1770_v33, %v2467_v52  ;;  %v1802_v43 = vld [vmem:[%s712_s29 + $0x3] ss:$0 sm:$0xff]  ;;  %s898_s23 = scalar_lea.vmem [#allocation8], %s2496_s25  ;;  %p705_p1 = scmp.ge.s32.totalorder %s708_s12, 2  }
 0x304   : >> { %v1758_v5 = vld [vmem:[%s714_s28] ss:$0 sm:$0xff]  ;;  %v1772_v6 = vld [vmem:[%s714_s28 + $0x1] ss:$0 sm:$0xff]  ;;  %v1788_v14 = vld [vmem:[%s714_s28 + $0x2] ss:$0 sm:$0xff]  ;;  %v1104_v40 = vmul.f32 %v1786_v38, %v2472_v53  ;;  %v1103_v42 = vmul.f32 %v1786_v38, %v2467_v52  ;;  %v1293_v46 = vmul.f32 %v1802_v43, %v2472_v53  ;;  %v1292_v48 = vmul.f32 %v1802_v43, %v2467_v52 }
 0x305   : >> { %v1957_v7 = vpack.c.bf16 %v1758_v5, %v1758_v5  ;;  %v1964_v10 = vpack.c.bf16 %v1772_v6, %v1772_v6  ;;  %v1971_v18 = vpack.c.bf16 %v1788_v14, %v1788_v14  ;;  %v1804_v20 = vld [vmem:[%s714_s28 + $0x3] ss:$0 sm:$0xff]  ;;  %v728_v34 = vmul.f32 1.442695, %v725_v31  ;;  %v2120_v9 = vld [vmem:[%s2659_s9 + $0x8] sm:$0xff] (%p705_p1)   ;;  %v2121_v11 = vld [vmem:[%s2659_s9 + $0x10] sm:$0xff] (%p705_p1)  }
 0x306   : >> { %v1978_v23 = vpack.c.bf16 %v1804_v20, %v1804_v20  ;;  %v726_v35 = vmul.f32 1.442695, %v724_v32  ;;  %v918_v39 = vmul.f32 1.442695, %v915_v36  ;;  %v916_v41 = vmul.f32 1.442695, %v914_v37 }
 0x307   : >> { %1958 = vmatprep.subr.bf16.mxu0 %v1957_v7  ;;  %2103 = vpow2.f32 %v728_v34  ;;  %v1107_v45 = vmul.f32 1.442695, %v1104_v40  ;;  %v1105_v47 = vmul.f32 1.442695, %v1103_v42  ;;  %v1296_v50 = vmul.f32 1.442695, %v1293_v46 }
 0x308   : >> { %1960 = vmatpush3.bf16.msra.mxu0 %v1957_v7  ;;  %2105 = vpow2.f32 %v726_v35  ;;  %v1294_v56 = vmul.f32 1.442695, %v1292_v48  ;;  %v1785_v32 = vld [vmem:[%s2531_s22 + $0x2] sm:$0x1]  ;;  %v1801_v34 = vld [vmem:[%s2531_s22 + $0x3] sm:$0x1] }
 0x309   : >> { %1965 = vmatprep.subr.bf16.mxu0 %v1964_v10  ;;  %2107 = vpow2.f32 %v918_v39  ;;  %v2119_v42 = vld [vmem:[%s2659_s9] sm:$0xff] (%p705_p1)   ;;  %s1817_s25 = sshll.u32 (%p705_p1), %s2221_s17, 1  ;;  %s1584_s30 = sshll.u32 (%p705_p1), %s374_s18, 4  ;;  %s2594_s30 = int_to_ptr.vmem [resolvable:$true] %s1584_s30 }
 0x30a   : >> { %2109 = vpow2.f32 %v916_v41  ;;  %s1580_s12 = sadd.s32 (%p705_p1), %s2217_s16, %s1817_s25  ;;  %s2674_s16 = sand.u32 (%p705_p1), 1, %s2209_s14  }
 0x30b   : >> { %1894 = vmatmul.mubr.msk.f32.vlgmr.msra.gmra.mrb[0].mxu0 %vm586_vm9, %v735_v15  ;;  %2111 = vpow2.f32 %v1107_v45  ;;  %v2122_v45 = vld [vmem:[%s2659_s9 + $0x18] sm:$0xff] (%p705_p1)   ;;  %s1818_s28 = sshll.u32 (%p705_p1), %s1580_s12, 7  ;;  %s1569_s17 = scalar_lea.sflag (%p705_p1), [#allocation10], %s2674_s16 }
 0x30c   : >> { %1967 = vmatpush3.bf16.msra.mxu0 %v1964_v10  ;;  %1907 = vmatprep.mubr.msk.f32.mxu0 %vm586_vm9, %v924_v16  ;;  %2113 = vpow2.f32 %v1105_v47  ;;  %s2127_s24 = scalar_lea.vmem (%p705_p1), %s2594_s30, 128  ;;  %s2256_s19 = smov (%p705_p1), [#allocation9]  }
 0x30d   : >> { %1972 = vmatprep.subr.bf16.mxu0 %v1971_v18  ;;  %2115 = vpow2.f32 %v1296_v50  ;;  %p2128_p2 = scmp.ne.s32.totalorder (%p705_p1), %s2594_s30, %s2127_s24  ;;  %s2131_s25 = sshll.u32 (%p705_p1), %s2256_s19, 4  ;;  %s2132_s25 = int_to_ptr.vmem [resolvable:$false] %s2131_s25 }
 0x30e   : >> { %2117 = vpow2.f32 %v1294_v56  ;;  %s2133_s12 = scalar_lea.vmem (%p705_p1), %s2132_s25, 256  ;;  %p2134_p6 = scmp.lt.s32.totalorder (%p705_p1), %s2594_s30, %s2132_s25 }
 0x30f   : >> { %1908 = vmatmul.mubr.msk.f32.vlgmr.msra.gmra.mrb[2].mxu0 %vm586_vm9, %v925_v21  ;;  %p2129_p4 = pnand (%p705_p1), %p2128_p2, %p2363_p3  ;;  %p2135_p7 = scmp.lt.s32.totalorder (%p705_p1), %s2133_s12, %s2127_s24 }
 0x310   : >> { %1974 = vmatpush3.bf16.msra.mxu0 %v1971_v18  ;;  %1921 = vmatprep.mubr.msk.f32.mxu0 %vm586_vm9, %v1113_v22  ;;  %v1769_v22 = vld [vmem:[%s2531_s22 + $0x1] sm:$0x1] }
 0x311   : >> { %1979 = vmatprep.subr.bf16.mxu0 %v1978_v23  ;;  %v2104_v49 = vpop.eup %2103  ;;  %p2130_p5 = pneg (%p705_p1), %p2129_p4  ;;  %p2136_p9 = por (%p705_p1), %p2135_p7, %p2134_p6 }
 0x312   : >> { %v2106_v51 = vpop.eup %2105  ;;  %v822_v57 = vmul.f32 %v2237_v55, %v2104_v49 }
 0x313   : >> { %1922 = vmatmul.mubr.msk.f32.vlgmr.msra.gmra.mrb[4].mxu0 %vm586_vm9, %v1114_v25  ;;  %v821_v58 = vmul.f32 %v2241_v54, %v2106_v51  ;;  %v2108_v59 = vpop.eup %2107  ;;  %v719_v54 = vld [vmem:[%s2531_s22] sm:$0x1]  ;;  %p2137_p10 = pnand (%p705_p1), %p2136_p9, %p2130_p5 }
 0x314   : >> { %1981 = vmatpush3.bf16.msra.mxu0 %v1978_v23  ;;  %1935 = vmatprep.mubr.msk.f32.mxu0 %vm586_vm9, %v1302_v26  ;;  %v2110_v61 = vpop.eup %2109 }
 0x315   : >> { %v2112_v2 = vpop.eup %2111  ;;  %1945 = vmatprep.subr.bf16.mxu0 (%p705_p1), %v2248_v3 }
 0x316   : >> { %v2114_v7 = vpop.eup %2113 }
 0x317   : >> { %1936 = vmatmul.mubr.msk.f32.vlgmr.msra.gmra.mrb[6].mxu0 %vm586_vm9, %v1303_v27  ;;  %v2116_v13 = vpop.eup %2115 }
 0x318   : >> { %v2118_v18 = vpop.eup %2117  ;;  %1953 = vmatprep.mubr.msk.bf16.mxu0 (%p705_p1), %vm2249_vm1, %v2248_v3  ;;  %1946 = vmatpush3.bf16.msra.mxu0 (%p705_p1), %v2119_v42 }
 0x319   : > { %1947 = vmatprep.subr.bf16.mxu0 (%p705_p1), %v2248_v3 }
 0x31c   : > { %1948 = vmatpush3.bf16.msra.mxu0 (%p705_p1), %v2120_v9 }
 0x31d   : > { %1949 = vmatprep.subr.bf16.mxu0 (%p705_p1), %v2248_v3 }
 0x320   : > { %1950 = vmatpush3.bf16.msra.mxu0 (%p705_p1), %v2121_v11 }
 0x321   : > { %1951 = vmatprep.subr.bf16.mxu0 (%p705_p1), %v2248_v3  ;;  %v1810_v3 = vld [vmem:[%s2658_s8] ss:$0 sm:$0xff] (%p705_p1) }
 0x322   : > { %v1478_v48 = vmul.f32 (%p705_p1), %v1810_v3, %v2457_v44 }
 0x324   : > { %1952 = vmatpush3.bf16.msra.mxu0 (%p705_p1), %v2122_v45 }
 0x3de   : >> { %v1895_v60 = vpop.f32.mrb[0].mxu0 }
 0x3df   : >> { %v824_v62 = vadd.f32 %v1895_v60, %v822_v57  ;;  %v812_v63 = vpop.f32.mrb[1].mxu0 }
 0x3e0   : >> { %v823_v0 = vadd.f32 %v821_v58, %v812_v63 }
 0x3e1   : >> { %v1012_v1 = vmul.f32 %v2108_v59, %v824_v62 }
 0x3e2   : >> { %v1909_v4 = vpop.f32.mrb[2].mxu0  ;;  %v1011_v5 = vmul.f32 %v2110_v61, %v823_v0  ;;  %v1962_v6 = vpack.c.bf16 %v824_v62, %v823_v0 }
 0x3e3   : >> { %v1014_v8 = vadd.f32 %v1909_v4, %v1012_v1  ;;  %v1002_v10 = vpop.f32.mrb[3].mxu0 }
 0x3e4   : >> { %v1013_v55 = vadd.f32 %v1011_v5, %v1002_v10  ;;  %1963 = vmatpush3.bf16.msra.mxu1 %v1962_v6 }
 0x3e5   : >> { %v1201_v12 = vmul.f32 %v2112_v2, %v1014_v8  ;;  %1968 = vmatprep.subr.bf16.mxu1 %v2252_v28 }
 0x3e6   : >> { %v1969_v14 = vpack.c.bf16 %v1014_v8, %v1013_v55  ;;  %v1923_v15 = vpop.f32.mrb[4].mxu0  ;;  %v1200_v16 = vmul.f32 %v2114_v7, %v1013_v55 }
 0x3e7   : >> { %v1203_v19 = vadd.f32 %v1923_v15, %v1201_v12  ;;  %1901 = vmatmul.mubr.msk.f32.vlgmr.msra.gmra.mrb[0].mxu1 %vm586_vm9, %v719_v54  ;;  %v1191_v20 = vpop.f32.mrb[5].mxu0 }
 0x3e8   : >> { %v1202_v21 = vadd.f32 %v1200_v16, %v1191_v20  ;;  %1970 = vmatpush3.bf16.msra.mxu1 %v1969_v14  ;;  %1914 = vmatprep.mubr.msk.f32.mxu1 %vm2253_vm11, %v2254_v29 }
 0x3e9   : >> { %v1390_v23 = vmul.f32 %v2116_v13, %v1203_v19  ;;  %1975 = vmatprep.subr.bf16.mxu1 %v2252_v28 }
 0x3ea   : >> { %v1976_v24 = vpack.c.bf16 %v1203_v19, %v1202_v21  ;;  %v1937_v25 = vpop.f32.mrb[6].mxu0  ;;  %v1389_v26 = vmul.f32 %v2118_v18, %v1202_v21 }
 0x3eb   : >> { %v1392_v27 = vadd.f32 %v1937_v25, %v1390_v23   ;;  %1915 = vmatmul.mubr.msk.f32.vlgmr.msra.gmra.mrb[2].mxu1 %vm586_vm9, %v1769_v22  ;;  %v1380_v30 = vpop.f32.mrb[7].mxu0 }
 0x3ec   : >> { %v1391_v31 = vadd.f32 %v1389_v26, %v1380_v30   ;;  %1977 = vmatpush3.bf16.msra.mxu1 %v1976_v24  ;;  %1928 = vmatprep.mubr.msk.f32.mxu1 %vm2253_vm11, %v2254_v29 }
 0x3ed   : >> { %1982 = vmatprep.subr.bf16.mxu1 %v2252_v28  ;;  %v2672_v55 = vmov %v1392_v27  ;;  %1469 = vst.msk [vmem:[#allocation2 + $0x8] sm:$0xff] (%p705_p1), %vm455_vm6, %v1392_v27 }
 0x3ee   : >> { %v1983_v33 = vpack.c.bf16 %v1392_v27, %v1391_v31  ;;  %v2673_v54 = vmov %v1391_v31  ;;  %1468 = vst.msk [vmem:[#allocation2] sm:$0xff] (%p705_p1), %vm455_vm6, %v1391_v31 }
 0x3ef   : >> { %1929 = vmatmul.mubr.msk.f32.vlgmr.msra.gmra.mrb[4].mxu1 %vm586_vm9, %v1785_v32 }
 0x3f0   : >> { %1984 = vmatpush3.bf16.msra.mxu1 %v1983_v33  ;;  %1942 = vmatprep.mubr.msk.f32.mxu1 %vm2253_vm11, %v2254_v29  ;;  %v1480_v29 = vsub.f32 (%p705_p1), 0.0, %v2438_v17 }
 0x3f2   : > { %v1481_v43 = vmul.f32 (%p705_p1), 1.442695, %v1480_v29 }
 0x3f3   : >> { %1943 = vmatmul.mubr.msk.f32.vlgmr.msra.gmra.mrb[6].mxu1 %vm586_vm9, %v1801_v34 }
 0x3f4   : > { %2123 = vpow2.f32 (%p705_p1), %v1481_v43 }
 0x3fe   : > { %v2124_v52 = vpop.eup (%p705_p1), %2123 }
 0x3ff   : > { %v1483_v53 = vadd.f32 (%p705_p1), 1.0, %v2124_v52 }
 0x401   : > { %2125 = vrcp.f32 (%p705_p1), %v1483_v53 }
 0x40b   : > { %v2126_v46 = vpop.eup (%p705_p1), %2125 }
 0x40c   : > { %v1485_v47 = vmul.f32 (%p705_p1), %v2126_v46, %v2438_v17 }
 0x4ba   : >> { %v894_v35 = vpop.f32.mrb[0].mxu1 }
 0x4bb   : >> { %900 = vst.msk [vmem:[%s898_s23] sm:$0x1] %vm899_vm12, %v894_v35  ;;  %v1902_v36 = vpop.f32.mrb[1].mxu1 }
 0x4be   : >> { %v1084_v37 = vpop.f32.mrb[2].mxu1 }
 0x4bf   : >> { %1777 = vst.msk [vmem:[%s898_s23 + $0x1] sm:$0x1] %vm899_vm12, %v1084_v37  ;;  %v1916_v38 = vpop.f32.mrb[3].mxu1 }
 0x4c1   : > { %707 = sbr.rel (!%p705_p1) target bundleno = 766 (0x2fe), region = 126 }
 0x4c2   : >> { %v1273_v39 = vpop.f32.mrb[4].mxu1 }
 0x4c3   : >> { %1793 = vst.msk [vmem:[%s898_s23 + $0x2] sm:$0x1] %vm899_vm12, %v1273_v39  ;;  %v1930_v28 = vpop.f32.mrb[5].mxu1 }
 0x4c6   : >> { %v1462_v40 = vpop.f32.mrb[6].mxu1 }
 0x4c7   : >> { %1809 = vst.msk [vmem:[%s898_s23 + $0x3] sm:$0x1] %vm899_vm12, %v1462_v40  ;;  %v1944_v41 = vpop.f32.mrb[7].mxu1  ;;  %s2255_s23 = smov (%p705_p1), 64  }
 0x4c8   : > { %1487 = vrot.lane.b32.xlu0 %v1485_v47, %s2255_s23  ;;  %s2592_s23 = scalar_lea.hbm %s2660_s10, %s1818_s28 }
 0x4ce   : > { %v1470_v49 = vld [vmem:[#allocation8] sm:$0xff] }
 0x4cf   : > { %v1479_v50 = vadd.f32 %v1478_v48, %v1470_v49 }
 0x53a   : > { %v1488_v51 = vpop.permute.xlu0 %1487 }
 0x53b   : > { %v1490_v56 = vmul.f32 %v1488_v51, %v1479_v50 }
 0x53d   : > { %v1491_v57 = vpack.c.bf16 %v1490_v56, %v1490_v56 }
 0x53f   : > { %1954 = vmatmul.mubr.msk.bf16.vlgmr.msra.gmra.mrb[0].mxu0 %vm455_vm6, %v1491_v57 }
 0x612   : > { %v1561_v17 = vpop.f32.mrb[0].mxu0 }
 0x613   : > { %1567 = vst.msk [vmem:[%s374_s18] sm:$0xff] %vm411_vm4, %v1561_v17  ;;  %v1955_v44 = vpop.f32.mrb[1].mxu0 }
 0x614   : > { %v1564_v58 = vpop.f32.mrb[2].mxu0 }
 0x615   : > { %2140 = shalt.err (!%p2137_p10)
}
 0x616   : > { %s2141_s18 = scalar_lea.hbm %s2592_s23, 128  ;;  %s2145_s29 = scalar_lea.hbm %s2660_s10, 512 }
 0x617   : > { %p2142_p11 = scmp.ne.s32.totalorder %s2592_s23, %s2141_s18  ;;  %p2146_p0 = scmp.lt.u32.totalorder %s2592_s23, %s2660_s10 }
 0x618   : > { %p2147_p1 = scmp.lt.u32.totalorder %s2145_s29, %s2141_s18  ;;  %p2149_p4 = scmp.lt.u32.totalorder %s2141_s18, %s2592_s23 }
 0x619   : > { %p2143_p12 = pnand %p2142_p11, %p2363_p3 }
 0x61a   : > { %p2148_p2 = por %p2147_p1, %p2146_p0 }
 0x61b   : > { %p2144_p13 = pneg %p2143_p12 }
 0x61c   : > { %p2150_p5 = por %p2149_p4, %p2148_p2 }
 0x61e   : > { %p2151_p6 = pnand %p2150_p5, %p2144_p13 }
 0x620   : > { %2154 = shalt.err (!%p2151_p6)
}
 0x621   : > { %1985 = dma.vmem_to_hbm [thread:$0]  (%p2363_p3), %s2594_s30, 128, %s2592_s23, %s1569_s17   ;;  %v1956_v59 = vpop.f32.mrb[3].mxu0 }
 0x622 PF: > { %p1991_p7 = scmp.ge.s32.totalorder %s2233_s20, 2  ;;  %s1596_s24 = sand.u32 1, %s2205_s13  }
 0x623   : > { %s1597_s19 = scalar_lea.sflag [#allocation10], %s1596_s24 }
 0x624   : > { %p1988_p9 = pnand %p1991_p7, %p2372_p8 }
 0x626   : > { %2200 = dma.done.wait (!%p1988_p9), %s1597_s19, 128  }
 0x627   : > { %2202 = vsyncadd (!%p1988_p9), %s1597_s19, 4294967168  ;;  %s23_s20 = sadd.s32 1, %s2233_s20   ;;  %s2675_s16 = sld [smem:[#allocation12_spill]] }
 0x628   : > { %p20_p10 = scmp.ge.s32.totalorder %s23_s20, 6   ;;  %s2676_s17 = sld [smem:[#allocation13_spill]] }
 0x629   : > { %s2677_s18 = sld [smem:[#allocation14_spill]]  ;;  %s2678_s19 = sld [smem:[#allocation15_spill]] }
 0x62a   : > { %s2679_s13 = smov %s2209_s14  ;;  %s2680_s14 = smov %s2213_s15 }
 0x62b   : > { %s2681_s15 = smov %s2381_s11  ;;  %22 = sbr.rel (!%p20_p10) target bundleno = 5 (0x5), region = 137 }
 0x632   :  { %1602 = vsyncpa [#allocation10], 1 }
 0x633   :  { %1604 = vsyncpa [#allocation10 + $0x1], 1 }

</bundles_post_ra>
